<compile_context>
chip_gen: v5e
topology: v5e:2x2
jax: 0.10.0
libtpu: 0.0.40
codegen_flags: <defaults>
</compile_context>

<pallas_src>
import functools
import math

import jax
import jax.numpy as jnp
from jax import lax
from jax.experimental import pallas as pl
from jax.experimental.pallas import tpu as pltpu


# --------------------------------------------------------------------------- #
# Kernel A: fused QKV projection                                               #
# --------------------------------------------------------------------------- #
def _qkv_proj_kernel(x_ref, w_ref, q_ref, k_ref, v_ref, *, head_size):
    """One (batch, seq-tile) step: qkv = x_tile @ [Wq*scale | Wk | Wv].

    x_ref: (1, Tt, E) bf16   w_ref: (E, 3H) bf16 (tiny resident weight)
    q_ref/k_ref/v_ref: (1, Tt, H) bf16 outputs.
    """
    H = head_size
    # One bf16 MXU matmul (f32 accumulation) for all three projections.
    qkv = jnp.dot(x_ref[0], w_ref[...], preferred_element_type=jnp.float32)
    # Column split at lane offsets H / 2H happens once per sequence tile.
    q_ref[0] = qkv[:, :H].astype(q_ref.dtype)
    k_ref[0] = qkv[:, H:2 * H].astype(k_ref.dtype)
    v_ref[0] = qkv[:, 2 * H:].astype(v_ref.dtype)


# --------------------------------------------------------------------------- #
# Kernel B: flash-style single-head attention (transposed output layout)       #
# --------------------------------------------------------------------------- #
def _attn_kernel(q_ref, k_ref, vt_ref, o_ref, m_ref, l_ref, acc_ref):
    """One (batch, q-tile, kv-tile) step of online-softmax attention.

    q_ref:  (1, Tq, H) bf16, pre-scaled by 1/sqrt(H)
    k_ref:  (1, Tk, H) bf16
    vt_ref: (1, H, Tk) bf16  (V transposed -> plain MXU matmul, lane-dense acc)
    o_ref:  (1, H, Tq) f32   (transposed output; written at the last kv step)
    m_ref/l_ref: (1, Tq) f32 running max / denominator
    acc_ref: (H, Tq) f32 running unnormalized output accumulator
    """
    ki = pl.program_id(2)

    @pl.when(ki == 0)
    def _():
        m_ref[...] = jnp.full(m_ref.shape, -jnp.inf, m_ref.dtype)
        l_ref[...] = jnp.zeros(l_ref.shape, l_ref.dtype)
        acc_ref[...] = jnp.zeros(acc_ref.shape, acc_ref.dtype)

    q = q_ref[0]      # (Tq, H)
    k = k_ref[0]      # (Tk, H)
    vt = vt_ref[0]    # (H, Tk)

    # scores^T: (Tk, Tq), contracting both operands on H (bf16 MXU, f32 acc).
    s_t = lax.dot_general(k, q, (((1,), (1,)), ((), ())),
                          preferred_element_type=jnp.float32)

    m_prev = m_ref[...]                                              # (1, Tq)
    m_new = jnp.maximum(m_prev, jnp.max(s_t, axis=0, keepdims=True))
    alpha = jnp.exp(m_prev - m_new)                                  # (1, Tq)
    p_t = jnp.exp(s_t - m_new)                                       # (Tk, Tq)
    l_ref[...] = alpha * l_ref[...] + jnp.sum(p_t, axis=0, keepdims=True)
    # (H, Tq) += (H, Tk) @ (Tk, Tq): plain MXU matmul, bf16 operands, f32 acc.
    acc_ref[...] = alpha * acc_ref[...] + jnp.dot(
        vt, p_t.astype(vt.dtype), preferred_element_type=jnp.float32)
    m_ref[...] = m_new

    @pl.when(ki == pl.num_programs(2) - 1)
    def _():
        # Denominator on the EUP; lane-dense (1, H, Tq) store of the output.
        o_ref[0] = (acc_ref[...] *
                    pl.reciprocal(l_ref[...], approx=True)).astype(o_ref.dtype)


# --------------------------------------------------------------------------- #
# Wrapper                                                                      #
# --------------------------------------------------------------------------- #
def _pick_tile(T, requested):
    if requested is not None:
        assert T % requested == 0 and (requested % 128 == 0 or requested == T)
        return requested
    # Largest 128-multiple tile dividing T (lane-dense, (8,128)-aligned blocks);
    # otherwise use the whole (small) sequence as a single full-extent block.
    for t in (512, 256, 128):
        if T % t == 0:
            return t
    return T


def head_forward(x, wq, wk, wv, *, q_tile=None, kv_tile=None, proj_tile=None):
    """softmax(x Wq (x Wk)^T / sqrt(head_size)) (x Wv), x of shape (B, T, E)."""
    B, T, E = x.shape
    H = wq.shape[1]
    out_dtype = x.dtype

    # Fold the 1/sqrt(head_size) score scale into Wq and fuse the three
    # projections into one (E, 3H) weight (both free, wrapper/trace-time).
    scale = 1.0 / math.sqrt(H)
    w_qkv = jnp.concatenate([wq * scale, wk, wv], axis=1).astype(jnp.bfloat16)
    x_bf = x.astype(jnp.bfloat16)

    t_tile = _pick_tile(T, proj_tile)
    tq = _pick_tile(T, q_tile)
    tk = _pick_tile(T, kv_tile)

    # ---- Kernel A: fused QKV projection (hoisted out of the attention kernel) --
    q, k, v = pl.pallas_call(
        functools.partial(_qkv_proj_kernel, head_size=H),
        out_shape=(
            jax.ShapeDtypeStruct((B, T, H), jnp.bfloat16),   # q (pre-scaled)
            jax.ShapeDtypeStruct((B, T, H), jnp.bfloat16),   # k
            jax.ShapeDtypeStruct((B, T, H), jnp.bfloat16),   # v
        ),
        grid=(B, T // t_tile),
        in_specs=[
            pl.BlockSpec((1, t_tile, E), lambda b, t: (b, t, 0)),
            pl.BlockSpec((E, 3 * H), lambda b, t: (0, 0)),   # tiny resident weight
        ],
        out_specs=(
            pl.BlockSpec((1, t_tile, H), lambda b, t: (b, t, 0)),
            pl.BlockSpec((1, t_tile, H), lambda b, t: (b, t, 0)),
            pl.BlockSpec((1, t_tile, H), lambda b, t: (b, t, 0)),
        ),
        compiler_params=pltpu.CompilerParams(
            dimension_semantics=("parallel", "parallel")),
        cost_estimate=pl.CostEstimate(
            flops=2 * B * T * E * 3 * H,
            transcendentals=0,
            bytes_accessed=2 * (B * T * E + E * 3 * H + 3 * B * T * H)),
    )(x_bf, w_qkv)

    # V transposed to (B, H, T): makes the PV matmul a plain (H,Tk)x(Tk,Tq) MXU
    # matmul and makes the attention output block / stores lane-dense.
    v_t = jnp.swapaxes(v, 1, 2)

    # ---- Kernel B: flash-style attention over KV tiles ----
    out_t = pl.pallas_call(
        _attn_kernel,
        out_shape=jax.ShapeDtypeStruct((B, H, T), jnp.float32),
        grid=(B, T // tq, T // tk),
        in_specs=[
            pl.BlockSpec((1, tq, H), lambda b, qi, ki: (b, qi, 0)),
            pl.BlockSpec((1, tk, H), lambda b, qi, ki: (b, ki, 0)),
            pl.BlockSpec((1, H, tk), lambda b, qi, ki: (b, 0, ki)),
        ],
        out_specs=pl.BlockSpec((1, H, tq), lambda b, qi, ki: (b, 0, qi)),
        scratch_shapes=[
            pltpu.VMEM((1, tq), jnp.float32),   # running max
            pltpu.VMEM((1, tq), jnp.float32),   # running denominator
            pltpu.VMEM((H, tq), jnp.float32),   # unnormalized output accumulator
        ],
        compiler_params=pltpu.CompilerParams(
            # batch / query-tile axes are independent -> megacore-shardable;
            # the kv axis carries the online-softmax scratch -> "arbitrary".
            dimension_semantics=("parallel", "parallel", "arbitrary")),
        cost_estimate=pl.CostEstimate(
            flops=4 * B * T * T * H,
            transcendentals=B * T * T,
            bytes_accessed=2 * 3 * B * T * H + 4 * B * T * H),
    )(q, k, v_t)

    # TODO(synk): for T not divisible by the chosen tiles, add explicit masking
    # of the padded KV tail before the online softmax (not needed for these shapes).
    return jnp.swapaxes(out_t, 1, 2).astype(out_dtype)


# --------------------------------------------------------------------------- #
# Parameter init and references                                                #
# --------------------------------------------------------------------------- #
def init_head_params(key, n_embd, head_size):
    """kaiming_normal_-style init (fan_in = head_size, gain = sqrt(2))."""
    kq, kk, kv = jax.random.split(key, 3)
    std = math.sqrt(2.0 / head_size)
    wq = jax.random.normal(kq, (n_embd, head_size), jnp.float32) * std
    wk = jax.random.normal(kk, (n_embd, head_size), jnp.float32) * std
    wv = jax.random.normal(kv, (n_embd, head_size), jnp.float32) * std
    return wq, wk, wv


def head_reference_f32(x, wq, wk, wv):
    """Exact-f32 reference, literal transcription of the PyTorch forward."""
    H = wq.shape[1]
    hi = jax.lax.Precision.HIGHEST
    q = jnp.matmul(x, wq, precision=hi)
    k = jnp.matmul(x, wk, precision=hi)
    v = jnp.matmul(x, wv, precision=hi)
    s = jnp.matmul(q, jnp.swapaxes(k, -2, -1), precision=hi) / math.sqrt(H)
    p = jax.nn.softmax(s, axis=-1)
    return jnp.matmul(p, v, precision=hi)


def head_reference_matched(x, wq, wk, wv):
    """Same math as the module, computed in the kernel's deliberate mixed-
    precision regime (bf16 MXU operands, f32 accumulation / softmax).  This
    isolates kernel logic (tiling, online softmax, transposed stores) from
    the bf16 rounding that the perf review asked for."""
    H = wq.shape[1]
    scale = 1.0 / math.sqrt(H)
    xb = x.astype(jnp.bfloat16)
    w_qkv = jnp.concatenate([wq * scale, wk, wv], axis=1).astype(jnp.bfloat16)
    qkv = jnp.matmul(xb, w_qkv, preferred_element_type=jnp.float32)
    q, k, v = [t.astype(jnp.bfloat16) for t in jnp.split(qkv, 3, axis=-1)]
    s = jnp.matmul(q, jnp.swapaxes(k, -2, -1), preferred_element_type=jnp.float32)
    m = jnp.max(s, axis=-1, keepdims=True)
    p = jnp.exp(s - m)
    num = jnp.matmul(p.astype(jnp.bfloat16), v, preferred_element_type=jnp.float32)
    return num / jnp.sum(p, axis=-1, keepdims=True)


if __name__ == "__main__":
    B, T, n_embd, head_size = 2, 8, 32, 16

    key = jax.random.PRNGKey(0)
    kx, kw, kx2 = jax.random.split(key, 3)
    x = jax.random.normal(kx, (B, T, n_embd), jnp.float32)
    wq, wk, wv = init_head_params(kw, n_embd, head_size)

    # 1) Small sequence: every block is a full-extent block (single-step grid axes).
    out = jax.block_until_ready(head_forward(x, wq, wk, wv))
    assert out.shape == (B, T, head_size)
    assert jnp.allclose(out, head_reference_matched(x, wq, wk, wv),
                        atol=3e-2, rtol=3e-2)
    # Sanity vs exact-f32 module math: logic errors give O(1) mean deviations,
    # the intended bf16-operand regime gives ~1e-3..1e-2.
    assert float(jnp.mean(jnp.abs(out - head_reference_f32(x, wq, wk, wv)))) < 0.05

    # 2) Longer sequence: exercises the multi-tile flash path (attention grid
    #    (2, 2, 2)) with lane-dense (1, H, 128) output stores.
    T2 = 256
    x2 = jax.random.normal(kx2, (B, T2, n_embd), jnp.float32)
    out2 = jax.block_until_ready(
        head_forward(x2, wq, wk, wv, q_tile=128, kv_tile=128, proj_tile=128))
    assert out2.shape == (B, T2, head_size)
    assert jnp.allclose(out2, head_reference_matched(x2, wq, wk, wv),
                        atol=3e-2, rtol=3e-2)
    assert float(jnp.mean(jnp.abs(out2 - head_reference_f32(x2, wq, wk, wv)))) < 0.05

    print("KERNEL_OK")
</pallas_src>

<mosaic_0001>
module attributes {stable_mosaic.version = 11 : i64} {
  func.func @_qkv_proj_kernel(%arg0: i32, %arg1: i32, %arg2: memref<1x8x32xbf16, #tpu.memory_space<vmem>>, %arg3: memref<32x48xbf16, #tpu.memory_space<vmem>>, %arg4: memref<1x8x16xbf16, #tpu.memory_space<vmem>>, %arg5: memref<1x8x16xbf16, #tpu.memory_space<vmem>>, %arg6: memref<1x8x16xbf16, #tpu.memory_space<vmem>>) attributes {dimension_semantics = [#tpu.dimension_semantics<parallel>, #tpu.dimension_semantics<parallel>], iteration_bounds = array<i64: 2, 1>, scalar_prefetch = 0 : i64, scratch_operands = 0 : i64, tpu.core_type = #tpu.core_type<tc>, window_params = [{transform_indices = @transform_0, window_bounds = array<i64: 1, 8, 32>}, {pipeline_mode = #tpu.pipeline_mode<synchronous>, transform_indices = @transform_1, window_bounds = array<i64: 32, 48>}, {transform_indices = @transform_2, window_bounds = array<i64: 1, 8, 16>}, {transform_indices = @transform_3, window_bounds = array<i64: 1, 8, 16>}, {transform_indices = @transform_4, window_bounds = array<i64: 1, 8, 16>}]} {
    %c0 = arith.constant 0 : index
    %c0_0 = arith.constant 0 : index
    %c0_1 = arith.constant 0 : index
    %0 = vector.load %arg2[%c0, %c0_0, %c0_1] : memref<1x8x32xbf16, #tpu.memory_space<vmem>>, vector<1x8x32xbf16>
    %1 = vector.shape_cast %0 : vector<1x8x32xbf16> to vector<8x32xbf16>
    %c0_2 = arith.constant 0 : index
    %c0_3 = arith.constant 0 : index
    %2 = vector.load %arg3[%c0_2, %c0_3] : memref<32x48xbf16, #tpu.memory_space<vmem>>, vector<32x48xbf16>
    %cst = arith.constant dense<0.000000e+00> : vector<8x48xf32>
    %3 = tpu.matmul %1, %2, %cst {dimension_numbers = #tpu.dot_dimension_numbers<[1], [0], [0], [1], [0, 0, 1, 1], [], []>} : vector<8x32xbf16>, vector<32x48xbf16>, vector<8x48xf32> -> vector<8x48xf32>
    %4 = vector.extract_strided_slice %3 {offsets = [0, 0], sizes = [8, 16], strides = [1, 1]} : vector<8x48xf32> to vector<8x16xf32>
    %5 = arith.truncf %4 : vector<8x16xf32> to vector<8x16xbf16>
    %c0_4 = arith.constant 0 : index
    %c0_5 = arith.constant 0 : index
    %c0_6 = arith.constant 0 : index
    %6 = vector.load %arg4[%c0_4, %c0_5, %c0_6] : memref<1x8x16xbf16, #tpu.memory_space<vmem>>, vector<1x8x16xbf16>
    %7 = vector.shape_cast %6 : vector<1x8x16xbf16> to vector<8x16xbf16>
    %8 = vector.shape_cast %5 : vector<8x16xbf16> to vector<1x8x16xbf16>
    tpu.vector_store %arg4[%c0_4, %c0_5, %c0_6], %8 {strides = array<i32>} : memref<1x8x16xbf16, #tpu.memory_space<vmem>>, vector<1x8x16xbf16>,
    %9 = vector.extract_strided_slice %3 {offsets = [0, 16], sizes = [8, 16], strides = [1, 1]} : vector<8x48xf32> to vector<8x16xf32>
    %10 = arith.truncf %9 : vector<8x16xf32> to vector<8x16xbf16>
    %c0_7 = arith.constant 0 : index
    %c0_8 = arith.constant 0 : index
    %c0_9 = arith.constant 0 : index
    %11 = vector.load %arg5[%c0_7, %c0_8, %c0_9] : memref<1x8x16xbf16, #tpu.memory_space<vmem>>, vector<1x8x16xbf16>
    %12 = vector.shape_cast %11 : vector<1x8x16xbf16> to vector<8x16xbf16>
    %13 = vector.shape_cast %10 : vector<8x16xbf16> to vector<1x8x16xbf16>
    tpu.vector_store %arg5[%c0_7, %c0_8, %c0_9], %13 {strides = array<i32>} : memref<1x8x16xbf16, #tpu.memory_space<vmem>>, vector<1x8x16xbf16>,
    %14 = vector.extract_strided_slice %3 {offsets = [0, 32], sizes = [8, 16], strides = [1, 1]} : vector<8x48xf32> to vector<8x16xf32>
    %15 = arith.truncf %14 : vector<8x16xf32> to vector<8x16xbf16>
    %c0_10 = arith.constant 0 : index
    %c0_11 = arith.constant 0 : index
    %c0_12 = arith.constant 0 : index
    %16 = vector.load %arg6[%c0_10, %c0_11, %c0_12] : memref<1x8x16xbf16, #tpu.memory_space<vmem>>, vector<1x8x16xbf16>
    %17 = vector.shape_cast %16 : vector<1x8x16xbf16> to vector<8x16xbf16>
    %18 = vector.shape_cast %15 : vector<8x16xbf16> to vector<1x8x16xbf16>
    tpu.vector_store %arg6[%c0_10, %c0_11, %c0_12], %18 {strides = array<i32>} : memref<1x8x16xbf16, #tpu.memory_space<vmem>>, vector<1x8x16xbf16>,
    return
  }
  func.func @transform_0(%arg0: i32, %arg1: i32) -> (i32, i32, i32) {
    %c0_i32 = arith.constant 0 : i32
    %c0_i32_0 = arith.constant 0 : i32
    return %arg0, %arg1, %c0_i32 : i32, i32, i32
  }
  func.func @transform_1(%arg0: i32, %arg1: i32) -> (i32, i32) {
    %c0_i32 = arith.constant 0 : i32
    %c0_i32_0 = arith.constant 0 : i32
    %c0_i32_1 = arith.constant 0 : i32
    return %c0_i32, %c0_i32_0 : i32, i32
  }
  func.func @transform_2(%arg0: i32, %arg1: i32) -> (i32, i32, i32) {
    %c0_i32 = arith.constant 0 : i32
    %c0_i32_0 = arith.constant 0 : i32
    return %arg0, %arg1, %c0_i32 : i32, i32, i32
  }
  func.func @transform_3(%arg0: i32, %arg1: i32) -> (i32, i32, i32) {
    %c0_i32 = arith.constant 0 : i32
    %c0_i32_0 = arith.constant 0 : i32
    return %arg0, %arg1, %c0_i32 : i32, i32, i32
  }
  func.func @transform_4(%arg0: i32, %arg1: i32) -> (i32, i32, i32) {
    %c0_i32 = arith.constant 0 : i32
    %c0_i32_0 = arith.constant 0 : i32
    return %arg0, %arg1, %c0_i32 : i32, i32, i32
  }
}

</mosaic_0001>

<bundles_post_ra>
// kernel: tpu_custom_call.1
= control target key start
LH: loop header
LB: loop body
LE: loop exit
PB: predicated region body
PF: predicated region fallthrough
CT: control target
= control target key end

     0   :  { %10 = vsyncpa [#allocation3], 0  ;;  %s1079_s0 = inlined_call_operand.hbm [shape: bf16[2,8,32], index: 0, kind: input, shape index: {}]   ;;  %s1080_s1 = inlined_call_operand.hbm [shape: bf16[32,48], index: 1, kind: input, shape index: {}]   ;;  %s1081_s2 = inlined_call_operand.hbm [shape: bf16[2,8,16], index: 2, kind: output, shape index: {0}]   ;;  %s1082_s3 = inlined_call_operand.hbm [shape: bf16[2,8,16], index: 3, kind: output, shape index: {1}]   ;;  %s1083_s4 = inlined_call_operand.hbm [shape: bf16[2,8,16], index: 4, kind: output, shape index: {2}]  }
   0x1   :  { %12 = vsyncpa [#allocation3 + $0x1], 0 }
   0x2   :  { %13 = vsyncpa [#allocation6], 0 }
   0x3   :  { %14 = vsyncpa [#allocation4], 0 }
   0x4   :  { %16 = vsyncpa [#allocation4 + $0x1], 0 }
   0x5   :  { %17 = vsyncpa [#allocation9], 0 }
   0x6   :  { %19 = vsyncpa [#allocation9 + $0x1], 0  ;;  %s887_s15 = smov 0   ;;  %s889_s16 = smov 0  }
   0x7   :  { %s891_s17 = smov 0   ;;  %s893_s18 = smov 0  }
   0x8   :  { %s895_s19 = smov 0   ;;  %s897_s20 = smov 0  }
   0x9 LB: > { %s918_s21 = sadd.s32 4294967295, %s855_s20   ;;  %p532_p0 = scmp.ge.s32.totalorder %s855_s20, 1  ;;  %s855_s20 = sphi %s897_s20, %s25_s20   ;;  %s851_s19 = sphi %s895_s19, %s1095_s19   ;;  %s847_s18 = sphi %s893_s18, %s1094_s18   ;;  %s843_s17 = sphi %s891_s17, %s1093_s17   ;;  %s839_s16 = sphi %s889_s16, %s1092_s16   ;;  %s835_s15 = sphi %s887_s15, %s1091_s15  }
   0xa   : > { %p60_p1 = scmp.eq.s32.totalorder %s918_s21, 0  ;;  %p175_p2 = scmp.lt.s32.totalorder %s855_s20, 3 }
   0xb   : > { %s186_s24 = sshll.u32 %s1080_s1, 4  ;;  %s857_s26 = smov [#allocation5]   ;;  %s187_s24 = int_to_ptr.hbm [resolvable:$true] %s186_s24 }
   0xc   : > { %p926_p3 = pnand %p532_p0, %p175_p2  ;;  %s188_s27 = sshll.u32 %s857_s26, 4  ;;  %s189_s27 = int_to_ptr.vmem [resolvable:$true] %s188_s27 }
   0xd   : > { %p534_p6 = scmp.ge.s32.totalorder %s855_s20, 2  ;;  %s858_s28 = smov 64  }
   0xe   : > { %p574_p4 = pneg %p926_p3  ;;  %s859_s29 = smov 4  }
   0xf   : > { %s1084_s30 = sadd.s32 4294967294, %s855_s20   ;;  %s37_s5 = sadd.s32 1, %s851_s19 }
  0x10   : > { %p575_p5 = pnand %p574_p4, %p60_p1  ;;  %s46_s6 = sadd.s32 1, %s843_s17 }
  0x11   : > { %p39_p7 = scmp.ge.s32.totalorder %s37_s5, 2  ;;  %p53_p8 = scmp.ne.s32.totalorder %s843_s17, %s839_s16 }
  0x12   : > { %577 = dma.hbm_to_vmem [thread:$0]  (!%p575_p5), %s187_s24, 256, %s189_s27, [#allocation6], %s858_s28, %s858_s28, %s859_s29  }
  0x13   : > { %p54_p9 = scmp.eq.s32.totalorder %s855_s20, 0  ;;  %p59_p10 = scmp.ne.s32.totalorder %s839_s16, %s835_s15 }
  0x14   : > { %s1097_s5 = smov (%p39_p7, %s37_s5), 0  ;;  %p106_p13 = scmp.eq.s32.totalorder %s918_s21, 1 }
  0x15   : > { %p945_p11 = por %p54_p9, %p53_p8  ;;  %p951_p12 = por %p60_p1, %p59_p10 }
  0x16   : > { %s41_s9 = ssub.s32 %s851_s19, %s1097_s5  ;;  %p112_p2 = scmp.eq.s32.totalorder %s1084_s30, 1 }
  0x17   : > { %p44_p0 = scmp.eq.s32.totalorder %s41_s9, 0  ;;  %p960_p4 = por %p106_p13, %p53_p8 }
  0x18   : > { %p593_p5 = scmp.lt.s32.totalorder %s855_s20, 2  ;;  %p968_p7 = por %p112_p2, %p59_p10 }
  0x19   : > { %s966_s11 = scalar_select %p44_p0, %s843_s17, %s46_s6  }
  0x1a   : > { %s202_s13 = sand.u32 1, %s843_s17   ;;  %s536_s22 = sshll.u32 %s851_s19, 2 }
  0x1b   : > { %s535_s14 = sshll.u32 %s202_s13, 2  ;;  %s211_s26 = scalar_lea.hbm %s1079_s0, %s536_s22 }
  0x1c   : > { %s206_s27 = scalar_lea.vmem [#allocation2], %s535_s14  ;;  %s213_s29 = sshll.u32 %s211_s26, 4  ;;  %s214_s29 = int_to_ptr.hbm [resolvable:$true] %s213_s29 }
  0x1d   : > { %s215_s28 = sshll.u32 %s206_s27, 4  ;;  %p579_p8 = pnand %p593_p5, %p945_p11  ;;  %s216_s28 = int_to_ptr.vmem [resolvable:$true] %s215_s28 }
  0x1e   : > { %s203_s6 = scalar_lea.sflag [#allocation3], %s202_s13  ;;  %224 = sbr.rel (%p926_p3) target bundleno = 305 (0x131), region = 28 }
  0x1f   : > { %581 = dma.hbm_to_vmem [thread:$0]  (!%p579_p8), %s214_s29, 64, %s216_s28, %s203_s6  }
  0x20   : > { %s982_s9 = sand.u32 (!%p926_p3), 1, %s839_s16  }
  0x21   : > { %s985_s23 = sshll.u32 (!%p926_p3), %s982_s9, 2  ;;  %s227_s14 = scalar_lea.sflag (!%p926_p3), [#allocation3], %s982_s9 }
  0x22   : > { %s230_s22 = scalar_lea.vmem (!%p926_p3), [#allocation2], %s985_s23 }
  0x23   : > { %818 = dma.done.wait (%p951_p12), %s227_s14, 64  }
  0x24   : > { %820 = vsyncadd (%p951_p12), %s227_s14, 4294967232 }
  0x25   : > { %822 = dma.done.wait (%p60_p1), [#allocation6], 256  }
  0x26   : > { %824 = vsyncadd (%p60_p1), [#allocation6], 4294967040  ;;  %v561_v0 = vld [vmem:[#allocation5 + $0x8] sm:$0xff]  ;;  %v560_v1 = vld [vmem:[#allocation5] sm:$0xff]  ;;  %vm289_vm0 = vcmask 261120   ;;  %s998_s25 = sshll.u32 %s847_s18, 2 }
  0x27   : > { %299 = vmatpush.bf16.msra.mxu0 %v561_v0  ;;  %v272_v2 = vld [vmem:[%s230_s22] sm:$0xf]  ;;  %s340_s13 = scalar_lea.hbm %s1081_s2, %s998_s25  ;;  %vm307_vm1 = vcmask 125952   ;;  %s256_s24 = scalar_lea.vmem [#allocation7], %s985_s23 }
  0x28   : > { %s342_s26 = sshll.u32 %s256_s24, 4  ;;  %s344_s27 = sshll.u32 %s340_s13, 4  ;;  %s343_s26 = int_to_ptr.vmem [resolvable:$true] %s342_s26  ;;  %s345_s27 = int_to_ptr.hbm [resolvable:$true] %s344_s27 }
  0x29   : > { %s860_s28 = smov 112   ;;  %s319_s18 = scalar_lea.sflag [#allocation4], %s982_s9 }
  0x2a   : > { %s723_s29 = sshra.s32 %s345_s27, 4  ;;  %s729_s7 = scalar_lea.hbm %s1081_s2, 8  ;;  %s724_s29 = int_to_ptr.hbm [resolvable:$true] %s723_s29 }
  0x2b   : > { %300 = vmatpush.bf16.msra.mxu0 %v560_v1  ;;  %s725_s6 = scalar_lea.hbm %s724_s29, 4  ;;  %p730_p10 = scmp.lt.s32.totalorder %s724_s29, %s1081_s2 }
  0x2c   : > { %p726_p1 = scmp.ne.s32.totalorder %s724_s29, %s725_s6  ;;  %p731_p11 = scmp.lt.s32.totalorder %s729_s7, %s725_s6 }
  0x2e   : > { %551 = vmatmul.msk.bf16.vlgmr.msra.gmra.mxu0 %vm289_vm0, %v272_v2  ;;  %p727_p3 = pnand %p726_p1, %p960_p4  ;;  %p732_p12 = por %p731_p11, %p730_p10 }
  0x30   : > { %p728_p9 = pneg %p727_p3 }
  0x32   : > { %p733_p13 = pnand %p732_p12, %p728_p9 }
  0xab   : > { %v302_v3 = vpop.f32.mrf.mxu0 }
  0xac   : > { %v306_v4 = vpack.c.bf16 %v302_v3, %v302_v3 }
  0xae   : > { %310 = vrot.lane.b32.xlu0 %v306_v4, %s860_s28  ;;  %308 = vst.msk [vmem:[%s256_s24] sm:$0xf] %vm307_vm1, %v306_v4 }
  0xaf   : > { %736 = shalt.err (!%p733_p13)
}
  0xb0   : > { %568 = dma.vmem_to_hbm [thread:$0]  (%p960_p4), %s343_s26, 64, %s345_s27, %s319_s18  }
  0xb1   : > { %s861_s9 = smov 96   ;;  %s355_s14 = scalar_lea.hbm %s1082_s3, %s998_s25 }
  0xb2   : > { %s323_s29 = sand.u32 1, %s918_s21   ;;  %s263_s6 = scalar_lea.vmem [#allocation8], %s985_s23 }
  0xb3   : > { %v304_v5 = vpop.f32.mrf.mxu0  ;;  %s357_s22 = sshll.u32 %s263_s6, 4  ;;  %s359_s7 = sshll.u32 %s355_s14, 4  ;;  %s358_s22 = int_to_ptr.vmem [resolvable:$true] %s357_s22  ;;  %s360_s7 = int_to_ptr.hbm [resolvable:$true] %s359_s7 }
  0xb4   : > { %s370_s26 = scalar_lea.hbm %s1083_s4, %s998_s25  ;;  %s1028_s27 = scalar_lea.sflag [#allocation9], %s323_s29 }
  0xb5   : > { %s751_s18 = sshra.s32 %s360_s7, 4  ;;  %s757_s28 = scalar_lea.hbm %s1082_s3, 8  ;;  %s752_s18 = int_to_ptr.hbm [resolvable:$true] %s751_s18 }
  0xb6   : > { %314 = vrot.lane.b32.xlu0 %v306_v4, %s861_s9  ;;  %s753_s9 = scalar_lea.hbm %s752_s18, 4  ;;  %p758_p8 = scmp.lt.s32.totalorder %s752_s18, %s1082_s3 }
  0xb7   : > { %p754_p0 = scmp.ne.s32.totalorder %s752_s18, %s753_s9  ;;  %p759_p1 = scmp.lt.s32.totalorder %s757_s28, %s753_s9 }
  0xb9   : > { %p755_p2 = pnand %p754_p0, %p960_p4  ;;  %p760_p3 = por %p759_p1, %p758_p8 }
  0xbb   : > { %p756_p5 = pneg %p755_p2 }
  0xbd   : > { %p761_p9 = pnand %p760_p3, %p756_p5 }
 0x120   : > { %v311_v6 = vpop.permute.xlu0 %310 }
 0x121   : > { %313 = vst.msk [vmem:[%s263_s6] sm:$0xf] %vm307_vm1, %v311_v6 }
 0x122   : > { %764 = shalt.err (!%p761_p9)
}
 0x123   : > { %569 = dma.vmem_to_hbm [thread:$0]  (%p960_p4), %s358_s22, 64, %s360_s7, %s1028_s27  }
 0x124   : > { %s270_s25 = scalar_lea.vmem [#allocation10], %s985_s23  ;;  %s374_s6 = sshll.u32 %s370_s26, 4  ;;  %s375_s6 = int_to_ptr.hbm [resolvable:$true] %s374_s6 }
 0x125   : > { %s372_s29 = sshll.u32 %s270_s25, 4  ;;  %s779_s30 = sshra.s32 %s375_s6, 4  ;;  %s373_s29 = int_to_ptr.vmem [resolvable:$true] %s372_s29  ;;  %s780_s30 = int_to_ptr.hbm [resolvable:$true] %s779_s30 }
 0x126   : > { %s781_s8 = scalar_lea.hbm %s780_s30, 4  ;;  %s785_s9 = scalar_lea.hbm %s1083_s4, 8 }
 0x127   : > { %p782_p10 = scmp.ne.s32.totalorder %s780_s30, %s781_s8  ;;  %p786_p13 = scmp.lt.s32.totalorder %s780_s30, %s1083_s4 }
 0x128   : > { %v315_v7 = vpop.permute.xlu0 %314  ;;  %p787_p0 = scmp.lt.s32.totalorder %s785_s9, %s781_s8 }
 0x129   : > { %317 = vst.msk [vmem:[%s270_s25] sm:$0xf] %vm307_vm1, %v315_v7  ;;  %p783_p11 = pnand %p782_p10, %p960_p4 }
 0x12a   : > { %p788_p2 = por %p787_p0, %p786_p13 }
 0x12b   : > { %p784_p12 = pneg %p783_p11 }
 0x12d   : > { %p789_p5 = pnand %p788_p2, %p784_p12 }
 0x12f   : > { %792 = shalt.err (!%p789_p5)
}
 0x130   : > { %570 = dma.vmem_to_hbm [thread:$0]  (%p960_p4), %s373_s29, 64, %s375_s6, %s1028_s27  }
 0x131 PF: > { %s386_s7 = sand.u32 1, %s835_s15   ;;  %p583_p8 = pnand %p534_p6, %p968_p7 }
 0x132   : > { %s387_s26 = scalar_lea.sflag [#allocation4], %s386_s7 }
 0x133   : > { %p584_p1 = pneg %p583_p8 }
 0x135   : > { %826 = dma.done.wait (%p584_p1), %s387_s26, 64  }
 0x136   : > { %828 = vsyncadd (%p584_p1), %s387_s26, 4294967232  ;;  %s1090_s21 = sadd.s32 4294967294, %s855_s20  }
 0x137   : > { %s396_s24 = sand.u32 1, %s1090_s21  }
 0x138   : > { %s397_s28 = scalar_lea.sflag [#allocation9], %s396_s24 }
 0x139   : > { %830 = dma.done.wait (%p584_p1), %s397_s28, 128  }
 0x13a   : > { %832 = vsyncadd (%p584_p1), %s397_s28, 4294967168  ;;  %s25_s20 = sadd.s32 1, %s855_s20   ;;  %s1091_s15 = smov %s839_s16 }
 0x13b   : > { %p22_p4 = scmp.ge.s32.totalorder %s25_s20, 4   ;;  %s1092_s16 = smov %s843_s17 }
 0x13c   : > { %s1093_s17 = smov %s966_s11  ;;  %s1094_s18 = smov %s851_s19 }
 0x13d   : > { %s1095_s19 = smov %s1097_s5  ;;  %24 = sbr.rel (!%p22_p4) target bundleno = 9 (0x9), region = 109 }
 0x142   :  { %413 = vsyncpa [#allocation3], 1 }
 0x143   :  { %415 = vsyncpa [#allocation3 + $0x1], 1 }
 0x144   :  { %416 = vsyncpa [#allocation6], 1 }
 0x145   :  { %417 = vsyncpa [#allocation4], 1 }
 0x146   :  { %419 = vsyncpa [#allocation4 + $0x1], 1 }
 0x147   :  { %420 = vsyncpa [#allocation9], 1 }
 0x148   :  { %422 = vsyncpa [#allocation9 + $0x1], 1 }

</bundles_post_ra>
